<compile_context>
chip_gen: v7x
topology: tpu7x:2x2x1
jax: 0.10.0
libtpu: 0.0.40
codegen_flags: <defaults>
</compile_context>

<pallas_src>
import math

import jax
import jax.numpy as jnp
from jax.experimental import pallas as pl
from jax.experimental.pallas import tpu as pltpu

EPS = 1e-5
_MAX_ROW_TILE = 1024          # roofline knee is ~512-1024 rows
_FALLBACK_VMEM = 64 << 20     # v7x per-TC capacity: safe lower bound everywhere


def _sublane_multiple(dtype) -> int:
    itemsize = jnp.dtype(dtype).itemsize
    return max(8, 32 // max(1, itemsize))   # 8 f32, 16 bf16, 32 int8/fp8


def _vmem_capacity_bytes() -> int:
    try:
        return int(pltpu.get_tpu_info().vmem_capacity_bytes)
    except Exception:
        return _FALLBACK_VMEM


def _num_tensorcores() -> int:
    # Best-effort TC count (v7x has 2/chip).  Defaults to 1, which on v5e/v6e
    # avoids shrinking tiles for nonexistent parallelism.
    try:
        info = pltpu.get_tpu_info()
        for attr in ("num_cores", "core_count", "tensorcore_count", "num_tensorcores"):
            v = getattr(info, attr, None)
            if isinstance(v, int) and v > 0:
                return v
    except Exception:
        pass
    return 1


def _align_rows(tm: int, rows: int, sub: int) -> int:
    """Row tile must be a multiple of `sub`, or exactly `rows` (full extent)."""
    tm = min(tm, rows)
    if tm == rows:
        return tm                     # full-extent block is always legal
    return max(sub, (tm // sub) * sub)


# -----------------------------------------------------------------------------
# Standalone LayerNorm kernels
# -----------------------------------------------------------------------------
def _ln_kernel_bias(x_ref, w_ref, b_ref, o_ref):
    x = x_ref[...].astype(jnp.float32)
    mean = jnp.mean(x, axis=-1, keepdims=True)
    xc = x - mean
    var = jnp.mean(xc * xc, axis=-1, keepdims=True)
    y = xc * jax.lax.rsqrt(var + EPS) * w_ref[...].astype(jnp.float32)
    y = y + b_ref[...].astype(jnp.float32)
    o_ref[...] = y.astype(o_ref.dtype)


def _ln_kernel_nobias(x_ref, w_ref, o_ref):
    x = x_ref[...].astype(jnp.float32)
    mean = jnp.mean(x, axis=-1, keepdims=True)
    xc = x - mean
    var = jnp.mean(xc * xc, axis=-1, keepdims=True)
    y = xc * jax.lax.rsqrt(var + EPS) * w_ref[...].astype(jnp.float32)
    o_ref[...] = y.astype(o_ref.dtype)


def layer_norm(x, weight, bias=None, *, row_block=None):
    """LayerNorm over the last axis of x (matches F.layer_norm, eps=1e-5)."""
    orig_shape = x.shape
    D = orig_shape[-1]
    rows = math.prod(orig_shape[:-1]) if len(orig_shape) > 1 else 1
    x2 = x.reshape(rows, D)
    # (D,) -> (1, D) is a free bitcast reshape; the f32 cast happens in-kernel.
    w2 = weight.reshape(1, D)
    b2 = None if bias is None else bias.reshape(1, D)

    itemsize = jnp.dtype(x.dtype).itemsize
    sub = _sublane_multiple(x.dtype)

    cap = _vmem_capacity_bytes()
    vmem_limit = int(min((cap * 3) // 4, 96 << 20))
    pipe_budget = int(min(cap // 2, 64 << 20))
    # 2 (double-buffer) x 2 (in+out) pipelined tiles + ~2x f32 upcast scratch.
    per_row_bytes = 4 * D * itemsize + 8 * D
    if row_block is not None:
        tm = max(1, row_block)
    else:
        tm = min(max(1, pipe_budget // per_row_bytes), _MAX_ROW_TILE)
        ncores = _num_tensorcores()
        if ncores > 1:
            # keep >= ncores grid steps so every TensorCore gets work (v7x)
            tm = min(tm, pl.cdiv(rows, ncores))
        # TODO(synk): rows < ~256 decode-shaped calls are launch-bound; callers
        # may prefer plain XLA LN there.
    tm = _align_rows(tm, rows, sub)
    grid_m = pl.cdiv(rows, tm)

    if b2 is not None:
        kernel = _ln_kernel_bias
        in_specs = [
            pl.BlockSpec((tm, D), lambda i: (i, 0)),
            pl.BlockSpec((1, D), lambda i: (0, 0)),
            pl.BlockSpec((1, D), lambda i: (0, 0)),
        ]
        args = (x2, w2, b2)
    else:
        kernel = _ln_kernel_nobias
        in_specs = [
            pl.BlockSpec((tm, D), lambda i: (i, 0)),
            pl.BlockSpec((1, D), lambda i: (0, 0)),
        ]
        args = (x2, w2)

    out = pl.pallas_call(
        kernel,
        out_shape=jax.ShapeDtypeStruct((rows, D), x.dtype),
        grid_spec=pltpu.PrefetchScalarGridSpec(
            num_scalar_prefetch=0,
            grid=(grid_m,),
            in_specs=in_specs,
            out_specs=pl.BlockSpec((tm, D), lambda i: (i, 0)),
        ),
        # TODO(synk): on v7x confirm "parallel" shards this axis across both
        # TensorCores; otherwise switch to pltpu.CORE_PARALLEL.
        compiler_params=pltpu.CompilerParams(
            dimension_semantics=("parallel",),
            vmem_limit_bytes=vmem_limit,
        ),
    )(*args)
    return out.reshape(orig_shape)


# -----------------------------------------------------------------------------
# Fused LayerNorm + Linear (the LN -> c_attn / LN -> c_fc prologue in Block)
# -----------------------------------------------------------------------------
def _ln_linear_kernel(x_ref, g_ref, b_ref, w_ref, pb_ref, o_ref):
    x = x_ref[...].astype(jnp.float32)
    mean = jnp.mean(x, axis=-1, keepdims=True)
    xc = x - mean
    var = jnp.mean(xc * xc, axis=-1, keepdims=True)
    y = xc * jax.lax.rsqrt(var + EPS) * g_ref[...].astype(jnp.float32)
    y = y + b_ref[...].astype(jnp.float32)
    acc = jnp.dot(y.astype(w_ref.dtype), w_ref[...],
                  preferred_element_type=jnp.float32)
    o_ref[...] = (acc + pb_ref[...].astype(jnp.float32)).astype(o_ref.dtype)


def layer_norm_linear(x, ln_weight, ln_bias, proj_weight, proj_bias=None,
                      *, row_block=None, col_block=None):
    """Fused F.linear(F.layer_norm(x, (D,), ln_weight, ln_bias, 1e-5),
    proj_weight, proj_bias).  proj_weight uses PyTorch (out, in) layout.

    x is read from HBM once, normalized in VMEM and fed straight to the MXU —
    removes the standalone-LN HBM round-trip (review's biggest structural win).
    """
    orig_shape = x.shape
    D = orig_shape[-1]
    rows = math.prod(orig_shape[:-1]) if len(orig_shape) > 1 else 1
    N = proj_weight.shape[0]
    x2 = x.reshape(rows, D)
    # Weight transpose / bias reshapes are per-layer constants in the real
    # model; hoist/cache them there.  Inline here for a self-contained demo.
    wp = proj_weight.T                                            # (D, N)
    g2 = ln_weight.reshape(1, D)
    b2 = (ln_bias if ln_bias is not None
          else jnp.zeros((D,), ln_weight.dtype)).reshape(1, D)
    pb2 = (proj_bias if proj_bias is not None
           else jnp.zeros((N,), x.dtype)).reshape(1, N)

    itemsize = jnp.dtype(x.dtype).itemsize
    sub = _sublane_multiple(x.dtype)
    cap = _vmem_capacity_bytes()
    vmem_limit = int(min((cap * 3) // 4, 96 << 20))

    if col_block is not None:
        tn = col_block
    elif N % 128 == 0:
        tn = min(N, 512)
    else:
        tn = N            # full-extent last dim (legal for any N)

    w_itemsize = jnp.dtype(proj_weight.dtype).itemsize
    w_bytes = 2 * D * tn * w_itemsize                   # double-buffered weight slab
    budget = int(min(cap // 2, 64 << 20)) - w_bytes
    # x/out pipelined tiles (double-buffered) + f32 upcast / accumulator scratch
    per_row_bytes = 4 * D * itemsize + 8 * D + 4 * tn * itemsize + 4 * tn
    tm = max(sub, budget // per_row_bytes) if budget > 0 else sub
    tm = min(tm, _MAX_ROW_TILE)
    if row_block is not None:
        tm = max(1, row_block)
    tm = _align_rows(tm, rows, sub)
    # TODO(synk): K (hidden) is untiled here; for very large n_embd add a K
    # grid axis with a VMEM accumulator.

    grid = (pl.cdiv(rows, tm), pl.cdiv(N, tn))
    out = pl.pallas_call(
        _ln_linear_kernel,
        out_shape=jax.ShapeDtypeStruct((rows, N), x.dtype),
        grid_spec=pltpu.PrefetchScalarGridSpec(
            num_scalar_prefetch=0,
            grid=grid,
            in_specs=[
                pl.BlockSpec((tm, D), lambda i, j: (i, 0)),
                pl.BlockSpec((1, D), lambda i, j: (0, 0)),
                pl.BlockSpec((1, D), lambda i, j: (0, 0)),
                pl.BlockSpec((D, tn), lambda i, j: (0, j)),
                pl.BlockSpec((1, tn), lambda i, j: (0, j)),
            ],
            out_specs=pl.BlockSpec((tm, tn), lambda i, j: (i, j)),
        ),
        compiler_params=pltpu.CompilerParams(
            dimension_semantics=("parallel", "parallel"),
            vmem_limit_bytes=vmem_limit,
        ),
    )(x2, g2, b2, wp, pb2)
    return out.reshape(orig_shape[:-1] + (N,))


# -----------------------------------------------------------------------------
# References + checks
# -----------------------------------------------------------------------------
def _reference_ln(x, weight, bias=None):
    x32 = x.astype(jnp.float32)
    mean = jnp.mean(x32, axis=-1, keepdims=True)
    var = jnp.mean((x32 - mean) ** 2, axis=-1, keepdims=True)
    y = (x32 - mean) * jax.lax.rsqrt(var + EPS) * weight.astype(jnp.float32)
    if bias is not None:
        y = y + bias.astype(jnp.float32)
    return y.astype(x.dtype)


def _reference_ln_linear(x, ln_w, ln_b, pw, pb=None):
    y = _reference_ln(x, ln_w, ln_b).astype(jnp.float32)
    out = jnp.einsum("...d,nd->...n", y, pw.astype(jnp.float32))
    if pb is not None:
        out = out + pb.astype(jnp.float32)
    return out.astype(x.dtype)


if __name__ == "__main__":
    key = jax.random.PRNGKey(0)
    ks = jax.random.split(key, 10)

    # --- check 1: module-consistent small shape (batch=2, seq=8, hidden=32), bias
    batch, seq, hidden = 2, 8, 32
    x = jax.random.normal(ks[0], (batch, seq, hidden), dtype=jnp.float32)
    w = 1.0 + 0.01 * jax.random.normal(ks[1], (hidden,), dtype=jnp.float32)
    b = 0.01 * jax.random.normal(ks[2], (hidden,), dtype=jnp.float32)
    y = layer_norm(x, w, b)
    jax.block_until_ready(y)
    assert jnp.allclose(y, _reference_ln(x, w, b), atol=1e-4, rtol=1e-4), \
        "LN(bias) mismatch"

    # --- check 2: hidden dim not a multiple of 128, ragged rows, no bias
    x_b = jax.random.normal(ks[3], (3, 5, 160), dtype=jnp.float32)
    w_b = 1.0 + 0.01 * jax.random.normal(ks[4], (160,), dtype=jnp.float32)
    y_b = layer_norm(x_b, w_b, None)
    jax.block_until_ready(y_b)
    assert jnp.allclose(y_b, _reference_ln(x_b, w_b, None), atol=1e-4, rtol=1e-4), \
        "LN(no-bias) mismatch"

    # --- check 3: rows not divisible by the tile -> partial edge block path
    x_c = jax.random.normal(ks[5], (1, 2065, 64), dtype=jnp.float32)
    w_c = 1.0 + 0.01 * jax.random.normal(ks[6], (64,), dtype=jnp.float32)
    b_c = 0.01 * jax.random.normal(ks[7], (64,), dtype=jnp.float32)
    y_c = layer_norm(x_c, w_c, b_c, row_block=512)
    jax.block_until_ready(y_c)
    assert jnp.allclose(y_c, _reference_ln(x_c, w_c, b_c), atol=1e-4, rtol=1e-4), \
        "LN(ragged rows) mismatch"

    # --- check 4: fused LN + QKV projection (Block.ln_1 -> attn.c_attn)
    pw = 0.02 * jax.random.normal(ks[8], (3 * hidden, hidden), dtype=jnp.float32)
    pb = 0.01 * jax.random.normal(ks[9], (3 * hidden,), dtype=jnp.float32)
    y_f = layer_norm_linear(x, w, b, pw, pb)
    jax.block_until_ready(y_f)
    assert jnp.allclose(y_f, _reference_ln_linear(x, w, b, pw, pb),
                        atol=1e-4, rtol=1e-4), "fused LN+Linear mismatch"

    print("KERNEL_OK")
</pallas_src>

<mosaic_0001>
module attributes {stable_mosaic.version = 11 : i64} {
  func.func @_ln_kernel_bias(%arg0: i32, %arg1: memref<16x32xf32, #tpu.memory_space<vmem>>, %arg2: memref<1x32xf32, #tpu.memory_space<vmem>>, %arg3: memref<1x32xf32, #tpu.memory_space<vmem>>, %arg4: memref<16x32xf32, #tpu.memory_space<vmem>>) attributes {dimension_semantics = [#tpu.dimension_semantics<parallel>], iteration_bounds = array<i64: 1>, scalar_prefetch = 0 : i64, scratch_operands = 0 : i64, tpu.core_type = #tpu.core_type<tc>, window_params = [{transform_indices = @transform_0, window_bounds = array<i64: 16, 32>}, {pipeline_mode = #tpu.pipeline_mode<synchronous>, transform_indices = @transform_1, window_bounds = array<i64: 1, 32>}, {pipeline_mode = #tpu.pipeline_mode<synchronous>, transform_indices = @transform_2, window_bounds = array<i64: 1, 32>}, {transform_indices = @transform_3, window_bounds = array<i64: 16, 32>}]} {
    %c0 = arith.constant 0 : index
    %c0_0 = arith.constant 0 : index
    %0 = vector.load %arg1[%c0, %c0_0] : memref<16x32xf32, #tpu.memory_space<vmem>>, vector<16x32xf32>
    %cst = arith.constant dense<0.000000e+00> : vector<16xf32>
    %1 = vector.multi_reduction <add>, %0, %cst [1] : vector<16x32xf32> to vector<16xf32>
    %2 = vector.shape_cast %1 : vector<16xf32> to vector<16x1xf32>
    %cst_1 = arith.constant 3.200000e+01 : f32
    %3 = vector.broadcast %cst_1 : f32 to vector<16x1xf32>
    %4 = arith.divf %2, %3 : vector<16x1xf32>
    %5 = vector.broadcast %4 : vector<16x1xf32> to vector<16x32xf32>
    %6 = arith.subf %0, %5 : vector<16x32xf32>
    %7 = arith.mulf %6, %6 : vector<16x32xf32>
    %cst_2 = arith.constant dense<0.000000e+00> : vector<16xf32>
    %8 = vector.multi_reduction <add>, %7, %cst_2 [1] : vector<16x32xf32> to vector<16xf32>
    %9 = vector.shape_cast %8 : vector<16xf32> to vector<16x1xf32>
    %cst_3 = arith.constant 3.200000e+01 : f32
    %10 = vector.broadcast %cst_3 : f32 to vector<16x1xf32>
    %11 = arith.divf %9, %10 : vector<16x1xf32>
    %cst_4 = arith.constant 9.99999974E-6 : f32
    %12 = vector.broadcast %cst_4 : f32 to vector<16x1xf32>
    %13 = arith.addf %11, %12 : vector<16x1xf32>
    %14 = math.rsqrt %13 : vector<16x1xf32>
    %15 = vector.broadcast %14 : vector<16x1xf32> to vector<16x32xf32>
    %16 = arith.mulf %6, %15 : vector<16x32xf32>
    %c0_5 = arith.constant 0 : index
    %c0_6 = arith.constant 0 : index
    %17 = vector.load %arg2[%c0_5, %c0_6] : memref<1x32xf32, #tpu.memory_space<vmem>>, vector<1x32xf32>
    %18 = vector.broadcast %17 : vector<1x32xf32> to vector<16x32xf32>
    %19 = arith.mulf %16, %18 : vector<16x32xf32>
    %c0_7 = arith.constant 0 : index
    %c0_8 = arith.constant 0 : index
    %20 = vector.load %arg3[%c0_7, %c0_8] : memref<1x32xf32, #tpu.memory_space<vmem>>, vector<1x32xf32>
    %21 = vector.broadcast %20 : vector<1x32xf32> to vector<16x32xf32>
    %22 = arith.addf %19, %21 : vector<16x32xf32>
    %c0_9 = arith.constant 0 : index
    %c0_10 = arith.constant 0 : index
    %23 = vector.load %arg4[%c0_9, %c0_10] : memref<16x32xf32, #tpu.memory_space<vmem>>, vector<16x32xf32>
    tpu.vector_store %arg4[%c0_9, %c0_10], %22 {strides = array<i32>} : memref<16x32xf32, #tpu.memory_space<vmem>>, vector<16x32xf32>,
    return
  }
  func.func @transform_0(%arg0: i32) -> (i32, i32) {
    %c0_i32 = arith.constant 0 : i32
    %c0_i32_0 = arith.constant 0 : i32
    return %arg0, %c0_i32 : i32, i32
  }
  func.func @transform_1(%arg0: i32) -> (i32, i32) {
    %c0_i32 = arith.constant 0 : i32
    %c0_i32_0 = arith.constant 0 : i32
    %c0_i32_1 = arith.constant 0 : i32
    return %c0_i32, %c0_i32_0 : i32, i32
  }
  func.func @transform_2(%arg0: i32) -> (i32, i32) {
    %c0_i32 = arith.constant 0 : i32
    %c0_i32_0 = arith.constant 0 : i32
    %c0_i32_1 = arith.constant 0 : i32
    return %c0_i32, %c0_i32_0 : i32, i32
  }
  func.func @transform_3(%arg0: i32) -> (i32, i32) {
    %c0_i32 = arith.constant 0 : i32
    %c0_i32_0 = arith.constant 0 : i32
    return %arg0, %c0_i32 : i32, i32
  }
}

</mosaic_0001>

<bundles_post_ra>
// kernel: tpu_custom_call.1
= control target key start
LH: loop header
LB: loop body
LE: loop exit
PB: predicated region body
PF: predicated region fallthrough
CT: control target
= control target key end

     0   :  { %8 = vsyncpa [#allocation3], 0  ;;  %s220_s0 = inlined_call_operand.hbm [shape: f32[16,32], index: 0, kind: input, shape index: {}]   ;;  %s221_s1 = inlined_call_operand.vmem [shape: f32[1,32], index: 1, kind: input, shape index: {}]   ;;  %s222_s2 = inlined_call_operand.vmem [shape: f32[1,32], index: 2, kind: input, shape index: {}]   ;;  %s223_s3 = inlined_call_operand.hbm [shape: f32[16,32], index: 3, kind: output, shape index: {}]  }
   0x1   :  { %9 = vsyncpa [#allocation4], 0  ;;  %s154_s12 = smov [#allocation2]   ;;  %s106_s16 = scalar_lea.hbm %s220_s0, 256 }
   0x2   :  { %s15_s13 = sshll.u32 %s154_s12, 4  ;;  %p107_p0 = scmp.ne.s32.totalorder %s220_s0, %s106_s16  ;;  %s16_s13 = int_to_ptr.vmem [resolvable:$true] %s15_s13 }
   0x3   :  { %p110_p1 = scmp.lt.u32.totalorder %s106_s16, %s220_s0 }
   0x5   :  { %p112_p2 = pnand %p110_p1, %p107_p0 }
   0x7   :  { %115 = shalt.err (!%p112_p2)
}
   0x8   :  { %s116_s21 = scalar_lea.vmem %s16_s13, 256  ;;  %p121_p4 = scmp.lt.s32.totalorder %s16_s13, %s16_s13 }
   0x9   :  { %p117_p3 = scmp.ne.s32.totalorder %s16_s13, %s116_s21  ;;  %p122_p5 = scmp.lt.s32.totalorder %s116_s21, %s116_s21 }
   0xb   :  { %p123_p6 = por %p122_p5, %p121_p4 }
   0xd   :  { %p124_p7 = pnand %p123_p6, %p117_p3 }
   0xf   :  { %127 = shalt.err (!%p124_p7)
}
  0x10   :  { %s155_s22 = smov 128   ;;  %s156_s23 = smov 8  }
  0x11   :  { %21 = dma.hbm_to_vmem [thread:$0]  %s220_s0, 256, %s16_s13, [#allocation3], %s155_s22, %s155_s22, %s156_s23  }
  0x12   :  { %150 = dma.done.wait [#allocation3], 256  }
  0x13   :  { %151 = vsyncadd [#allocation3], 4294967040  ;;  %vm31_vm0 = vcmask 261120   ;;  %v29_v0 = vld [vmem:[#allocation2] sm:$0xff]  ;;  %v30_v1 = vld [vmem:[#allocation2 + $0x8] sm:$0xff]  ;;  %s157_s29 = smov [#allocation5]  }
  0x14   :  { %v32_v2 = vsel %vm31_vm0, %v29_v0, 0.0  ;;  %v35_v3 = vsel %vm31_vm0, %v30_v1, 0.0  ;;  %v96_v21 = vld [vmem:[%s221_s1] ss:$0 sm:$0xff]  ;;  %s84_s30 = sshll.u32 %s157_s29, 4  ;;  %s85_s30 = int_to_ptr.vmem [resolvable:$true] %s84_s30 }
  0x15   :  { %33 = vadd.xlane.f32.xlu0 %v32_v2  ;;  %v97_v23 = vld [vmem:[%s222_s2] ss:$0 sm:$0xff]  ;;  %s128_s4 = scalar_lea.vmem %s85_s30, 256  ;;  %p133_p9 = scmp.lt.s32.totalorder %s85_s30, %s85_s30 }
  0x16   :  { %p129_p8 = scmp.ne.s32.totalorder %s85_s30, %s128_s4  ;;  %p134_p10 = scmp.lt.s32.totalorder %s128_s4, %s128_s4 }
  0x18   :  { %p135_p11 = por %p134_p10, %p133_p9 }
  0x19   :  { %36 = vadd.xlane.f32.xlu0 %v35_v3 }
  0x1a   :  { %p136_p12 = pnand %p135_p11, %p129_p8 }
  0xa2   :  { %v34_v4 = vpop.xlane.xlu0 %33 }
  0xa3   :  { %v39_v5 = vmul.f32 0.03125, %v34_v4 }
  0xa5   :  { %v41_v6 = vsub.f32 %v29_v0, %v39_v5 }
  0xa6   :  { %v37_v7 = vpop.xlane.xlu0 %36 }
  0xa7   :  { %v40_v8 = vmul.f32 0.03125, %v37_v7  ;;  %v43_v9 = vmul.f32 %v41_v6, %v41_v6 }
  0xa9   :  { %v42_v10 = vsub.f32 %v30_v1, %v40_v8  ;;  %v45_v11 = vsel %vm31_vm0, %v43_v9, 0.0 }
  0xaa   :  { %46 = vadd.xlane.f32.xlu1 %v45_v11 }
  0xab   :  { %v44_v12 = vmul.f32 %v42_v10, %v42_v10 }
  0xad   :  { %v48_v13 = vsel %vm31_vm0, %v44_v12, 0.0 }
  0xae   :  { %49 = vadd.xlane.f32.xlu1 %v48_v13 }
 0x137   :  { %v47_v14 = vpop.xlane.xlu1 %46 }
 0x138   :  { %v51_v15 = vmul.f32 0.03125, %v47_v14 }
 0x13a   :  { %v53_v16 = vadd.f32 1e-05, %v51_v15 }
 0x13b   :  { %v50_v17 = vpop.xlane.xlu1 %49 }
 0x13c   :  { %102 = vrsqrt.f32 %v53_v16  ;;  %v52_v18 = vmul.f32 0.03125, %v50_v17 }
 0x13e   :  { %v54_v19 = vadd.f32 1e-05, %v52_v18 }
 0x140   :  { %104 = vrsqrt.f32 %v54_v19 }
 0x146   :  { %v103_v20 = vpop.eup %102 }
 0x147   :  { %v57_v22 = vmul.f32 %v103_v20, %v41_v6 }
 0x149   :  { %v66_v24 = vmul.f32 %v96_v21, %v57_v22 }
 0x14a   :  { %v105_v25 = vpop.eup %104 }
 0x14b   :  { %v58_v26 = vmul.f32 %v105_v25, %v42_v10  ;;  %v75_v27 = vadd.f32 %v97_v23, %v66_v24 }
 0x14d   :  { %v67_v28 = vmul.f32 %v96_v21, %v58_v26  ;;  %77 = vst.msk [vmem:[#allocation5] sm:$0xff] %vm31_vm0, %v75_v27 }
 0x14f   :  { %v76_v29 = vadd.f32 %v97_v23, %v67_v28 }
 0x151   :  { %78 = vst.msk [vmem:[#allocation5 + $0x8] sm:$0xff] %vm31_vm0, %v76_v29 }
 0x152   :  { %139 = shalt.err (!%p136_p12)
}
 0x153   :  { %s140_s5 = scalar_lea.hbm %s223_s3, 256 }
 0x154   :  { %p141_p13 = scmp.ne.s32.totalorder %s223_s3, %s140_s5  ;;  %p144_p0 = scmp.lt.u32.totalorder %s140_s5, %s223_s3 }
 0x156   :  { %p146_p1 = pnand %p144_p0, %p141_p13 }
 0x158   :  { %149 = shalt.err (!%p146_p1)
}
 0x159   :  { %90 = dma.vmem_to_hbm [thread:$0]  %s85_s30, 256, %s223_s3, [#allocation4], %s155_s22, %s155_s22, %s156_s23  }
 0x15a   :  { %152 = dma.done.wait [#allocation4], 256  }
 0x15b   :  { %153 = vsyncadd [#allocation4], 4294967040 }
 0x15c   :  { %94 = vsyncpa [#allocation3], 1 }
 0x15d   :  { %95 = vsyncpa [#allocation4], 1 }

</bundles_post_ra>
